<compile_context>
chip_gen: v5e
topology: v5e:2x2
jax: 0.10.0
libtpu: 0.0.40
codegen_flags: <defaults>
</compile_context>

<pallas_src>
import math

import jax
import jax.numpy as jnp
from jax import lax
from jax.experimental import pallas as pl
from jax.experimental.pallas import tpu as pltpu

_INV_SQRT2 = 1.0 / math.sqrt(2.0)

# Abramowitz & Stegun 7.1.26 erf coefficients (|error| <= 1.5e-7).
_AS_P = 0.3275911
_AS_A1 = 0.254829592
_AS_A2 = -0.284496736
_AS_A3 = 1.421413741
_AS_A4 = -1.453152027
_AS_A5 = 1.061405429

_LANES = 128          # lane width of a vreg
_MAX_WIDTH = 4096     # widest lane-dense last dim we reshape to
_ROW_ALIGN = 32       # covers the sublane tile for f32/bf16/int8
_MIN_PIPELINE_BYTES = 1 * 1024 * 1024   # below this, grid=(1,) is fine


def _target_block_bytes():
    """Per-array block budget.  2 MiB is safe everywhere (v5e: 2 arrays x 2
    buffers x 2 MiB = 8 MiB < 16 MiB scoped-VMEM default); bump to 4 MiB only
    on positively-identified v6e/v7x to amortize per-step overhead against
    their faster HBM (16 MiB double-buffered < 32 MiB scoped default)."""
    try:
        kind = jax.devices()[0].device_kind.lower()
    except Exception:
        return 2 * 1024 * 1024
    if "v6" in kind or "v7" in kind:
        return 4 * 1024 * 1024
    return 2 * 1024 * 1024


def _gelu_kernel(x_ref, o_ref):
    # Exact GeLU semantics: x * 0.5 * (1 + erf(x / sqrt(2))), computed in f32
    # (v5e VPU/EUP have no bf16; also keeps accuracy for low-precision in).
    x = x_ref[...].astype(jnp.float32)
    z = x * _INV_SQRT2
    az = jnp.abs(z)
    # A&S 7.1.26: erf(|z|) = 1 - poly(t) * exp(-z^2), t = 1 / (1 + p*|z|).
    # exp / reciprocal go to the EUP slot; the remaining VALU work stays under
    # the HBM-roofline op budget on v6e/v7x (unlike lax.erf's polynomial).
    t = 1.0 / (1.0 + _AS_P * az)
    poly = t * (_AS_A1 + t * (_AS_A2 + t * (_AS_A3 + t * (_AS_A4 + t * _AS_A5))))
    erf_abs = 1.0 - poly * jnp.exp(-(z * z))
    erf_z = jnp.where(z < 0.0, -erf_abs, erf_abs)
    o_ref[...] = (x * 0.5 * (1.0 + erf_z)).astype(o_ref.dtype)


def _gelu_jnp(x):
    """Plain-JAX exact GeLU for tiny tails (<128 elements)."""
    xf = x.astype(jnp.float32)
    return (xf * 0.5 * (1.0 + lax.erf(xf * _INV_SQRT2))).astype(x.dtype)


def _choose_width(n_main):
    """Widest 128-multiple divisor of n_main, capped at _MAX_WIDTH.
    n_main is a multiple of 128, so 128 always terminates the search."""
    w_max = min(_MAX_WIDTH, n_main)
    for w in range(w_max, _LANES - 1, -_LANES):
        if n_main % w == 0:
            return w
    return _LANES


def _choose_block_rows(rows, width, itemsize, block_budget_bytes):
    max_block_rows = max(
        _ROW_ALIGN,
        (block_budget_bytes // (width * itemsize)) // _ROW_ALIGN * _ROW_ALIGN)
    total_bytes = rows * width * itemsize
    if rows <= _ROW_ALIGN or total_bytes <= _MIN_PIPELINE_BYTES:
        # Small slab: one (or few) full-extent block; per-step overhead would
        # dominate any pipelining gain.
        return min(rows, max_block_rows)

    # Pipeline floor: aim for >= 4 grid steps so input DMA, VPU compute and
    # writeback overlap instead of running back-to-back.
    block_rows = max_block_rows
    steps = pl.cdiv(rows, block_rows)
    if steps < 4:
        block_rows = pl.cdiv(pl.cdiv(rows, 4), _ROW_ALIGN) * _ROW_ALIGN
        steps = pl.cdiv(rows, block_rows)

    # Prefer an even step count so v7x's 2 TensorCores split the "parallel"
    # axis without a lone trailing step.
    if steps > 1 and steps % 2 == 1:
        alt = pl.cdiv(pl.cdiv(rows, steps + 1), _ROW_ALIGN) * _ROW_ALIGN
        if alt >= _ROW_ALIGN and pl.cdiv(rows, alt) % 2 == 0:
            block_rows = alt

    return max(_ROW_ALIGN, min(block_rows, rows))


def gelu_pallas(x):
    """Exact-erf GeLU, elementwise, any shape / float dtype."""
    orig_shape = x.shape
    orig_dtype = x.dtype
    n = x.size
    if n == 0:
        return x
    itemsize = jnp.dtype(orig_dtype).itemsize

    x_flat = jnp.ravel(x)

    # Largest 128-aligned prefix runs through the kernel; the (<128-element)
    # tail — if any — is computed with plain jnp.  No pad / no full-output
    # slice round-trips.
    n_main = (n // _LANES) * _LANES
    if n_main == 0:
        return _gelu_jnp(x_flat).reshape(orig_shape)

    width = _choose_width(n_main)
    rows = n_main // width
    x_main = x_flat if n_main == n else x_flat[:n_main]
    x2d = x_main.reshape(rows, width)

    block_rows = _choose_block_rows(rows, width, itemsize, _target_block_bytes())
    grid = (pl.cdiv(rows, block_rows),)  # ragged last block is write-masked

    out2d = pl.pallas_call(
        _gelu_kernel,
        out_shape=jax.ShapeDtypeStruct((rows, width), orig_dtype),
        grid_spec=pltpu.PrefetchScalarGridSpec(
            num_scalar_prefetch=0,
            grid=grid,
            # NOTE: if profiling shows exposed input DMA, add
            # pipeline_mode=pl.Buffered(3) on this input spec only.
            in_specs=[pl.BlockSpec((block_rows, width), lambda i: (i, 0))],
            out_specs=pl.BlockSpec((block_rows, width), lambda i: (i, 0)),
        ),
        compiler_params=pltpu.CompilerParams(
            # "parallel" lets v7x shard row-blocks across both TensorCores.
            dimension_semantics=("parallel",)),
    )(x2d)

    out_flat = out2d.reshape(-1)
    if n_main < n:
        tail_out = _gelu_jnp(x_flat[n_main:])
        out_flat = jnp.concatenate([out_flat, tail_out])
    return out_flat.reshape(orig_shape)


def gelu_ref(x):
    xf = x.astype(jnp.float32)
    return (xf * 0.5 * (1.0 + lax.erf(xf * _INV_SQRT2))).astype(x.dtype)


if __name__ == "__main__":
    key = jax.random.PRNGKey(0)
    k0, k1, k2, k3 = jax.random.split(key, 4)

    # Primary check: NCHW-like input consistent with the module.
    x = jax.random.normal(k0, (2, 4, 16, 16), dtype=jnp.float32)
    y = gelu_pallas(x)
    jax.block_until_ready(y)
    y_ref = gelu_ref(x)
    assert y.shape == x.shape and y.dtype == x.dtype
    assert jnp.allclose(y, y_ref, atol=1e-5, rtol=1e-5)

    # Tiny ragged input (< 128 elements -> plain-jnp path).
    x_odd = jax.random.normal(k1, (3, 5, 7), dtype=jnp.float32)
    y_odd = gelu_pallas(x_odd)
    jax.block_until_ready(y_odd)
    assert jnp.allclose(y_odd, gelu_ref(x_odd), atol=1e-5, rtol=1e-5)

    # Ragged input with a 128-aligned prefix + <128 tail (prefix+tail path).
    x_rag = jax.random.normal(k2, (3, 50), dtype=jnp.float32)
    y_rag = gelu_pallas(x_rag)
    jax.block_until_ready(y_rag)
    assert jnp.allclose(y_rag, gelu_ref(x_rag), atol=1e-5, rtol=1e-5)

    # Multi-block grid (>1 MiB slab -> pipelined, even step count),
    # with a ragged (write-masked) last block: rows=200, width=4096.
    x_big = jax.random.normal(k3, (200, 4096), dtype=jnp.float32)
    y_big = gelu_pallas(x_big)
    jax.block_until_ready(y_big)
    assert jnp.allclose(y_big, gelu_ref(x_big), atol=1e-5, rtol=1e-5)

    print("KERNEL_OK")
</pallas_src>

<mosaic_0001>
module attributes {stable_mosaic.version = 11 : i64} {
  func.func @_gelu_kernel(%arg0: i32, %arg1: memref<1x2048xf32, #tpu.memory_space<vmem>>, %arg2: memref<1x2048xf32, #tpu.memory_space<vmem>>) attributes {dimension_semantics = [#tpu.dimension_semantics<parallel>], iteration_bounds = array<i64: 1>, scalar_prefetch = 0 : i64, scratch_operands = 0 : i64, tpu.core_type = #tpu.core_type<tc>, window_params = [{transform_indices = @transform_0, window_bounds = array<i64: 1, 2048>}, {transform_indices = @transform_1, window_bounds = array<i64: 1, 2048>}]} {
    %c0 = arith.constant 0 : index
    %c0_0 = arith.constant 0 : index
    %0 = vector.load %arg1[%c0, %c0_0] : memref<1x2048xf32, #tpu.memory_space<vmem>>, vector<1x2048xf32>
    %cst = arith.constant 0.707106769 : f32
    %1 = vector.broadcast %cst : f32 to vector<1x2048xf32>
    %2 = arith.mulf %0, %1 : vector<1x2048xf32>
    %3 = math.absf %2 : vector<1x2048xf32>
    %cst_1 = arith.constant 0.327591091 : f32
    %4 = vector.broadcast %cst_1 : f32 to vector<1x2048xf32>
    %5 = arith.mulf %4, %3 : vector<1x2048xf32>
    %cst_2 = arith.constant 1.000000e+00 : f32
    %6 = vector.broadcast %cst_2 : f32 to vector<1x2048xf32>
    %7 = arith.addf %6, %5 : vector<1x2048xf32>
    %cst_3 = arith.constant 1.000000e+00 : f32
    %8 = vector.broadcast %cst_3 : f32 to vector<1x2048xf32>
    %9 = arith.divf %8, %7 : vector<1x2048xf32>
    %cst_4 = arith.constant 1.06140542 : f32
    %10 = vector.broadcast %cst_4 : f32 to vector<1x2048xf32>
    %11 = arith.mulf %9, %10 : vector<1x2048xf32>
    %cst_5 = arith.constant -1.45315206 : f32
    %12 = vector.broadcast %cst_5 : f32 to vector<1x2048xf32>
    %13 = arith.addf %12, %11 : vector<1x2048xf32>
    %14 = arith.mulf %9, %13 : vector<1x2048xf32>
    %cst_6 = arith.constant 1.42141378 : f32
    %15 = vector.broadcast %cst_6 : f32 to vector<1x2048xf32>
    %16 = arith.addf %15, %14 : vector<1x2048xf32>
    %17 = arith.mulf %9, %16 : vector<1x2048xf32>
    %cst_7 = arith.constant -0.284496725 : f32
    %18 = vector.broadcast %cst_7 : f32 to vector<1x2048xf32>
    %19 = arith.addf %18, %17 : vector<1x2048xf32>
    %20 = arith.mulf %9, %19 : vector<1x2048xf32>
    %cst_8 = arith.constant 0.254829586 : f32
    %21 = vector.broadcast %cst_8 : f32 to vector<1x2048xf32>
    %22 = arith.addf %21, %20 : vector<1x2048xf32>
    %23 = arith.mulf %9, %22 : vector<1x2048xf32>
    %24 = arith.mulf %2, %2 : vector<1x2048xf32>
    %cst_9 = arith.constant 0.000000e+00 : f32
    %25 = vector.broadcast %cst_9 : f32 to vector<1x2048xf32>
    %26 = arith.subf %25, %24 : vector<1x2048xf32>
    %27 = math.exp %26 : vector<1x2048xf32>
    %28 = arith.mulf %23, %27 : vector<1x2048xf32>
    %cst_10 = arith.constant 1.000000e+00 : f32
    %29 = vector.broadcast %cst_10 : f32 to vector<1x2048xf32>
    %30 = arith.subf %29, %28 : vector<1x2048xf32>
    %cst_11 = arith.constant 0.000000e+00 : f32
    %31 = vector.broadcast %cst_11 : f32 to vector<1x2048xf32>
    %32 = arith.cmpf olt, %2, %31 : vector<1x2048xf32>
    %cst_12 = arith.constant 0.000000e+00 : f32
    %33 = vector.broadcast %cst_12 : f32 to vector<1x2048xf32>
    %34 = arith.subf %33, %30 : vector<1x2048xf32>
    %35 = arith.select %32, %34, %30 : vector<1x2048xi1>, vector<1x2048xf32>
    %cst_13 = arith.constant 5.000000e-01 : f32
    %36 = vector.broadcast %cst_13 : f32 to vector<1x2048xf32>
    %37 = arith.mulf %0, %36 : vector<1x2048xf32>
    %cst_14 = arith.constant 1.000000e+00 : f32
    %38 = vector.broadcast %cst_14 : f32 to vector<1x2048xf32>
    %39 = arith.addf %38, %35 : vector<1x2048xf32>
    %40 = arith.mulf %37, %39 : vector<1x2048xf32>
    %c0_15 = arith.constant 0 : index
    %c0_16 = arith.constant 0 : index
    %41 = vector.load %arg2[%c0_15, %c0_16] : memref<1x2048xf32, #tpu.memory_space<vmem>>, vector<1x2048xf32>
    tpu.vector_store %arg2[%c0_15, %c0_16], %40 {strides = array<i32>} : memref<1x2048xf32, #tpu.memory_space<vmem>>, vector<1x2048xf32>,
    return
  }
  func.func @transform_0(%arg0: i32) -> (i32, i32) {
    %c0_i32 = arith.constant 0 : i32
    %c0_i32_0 = arith.constant 0 : i32
    return %arg0, %c0_i32 : i32, i32
  }
  func.func @transform_1(%arg0: i32) -> (i32, i32) {
    %c0_i32 = arith.constant 0 : i32
    %c0_i32_0 = arith.constant 0 : i32
    return %arg0, %c0_i32 : i32, i32
  }
}

</mosaic_0001>

<bundles_post_ra>
// kernel: tpu_custom_call.1
= control target key start
LH: loop header
LB: loop body
LE: loop exit
PB: predicated region body
PF: predicated region fallthrough
CT: control target
= control target key end

     0   :  { %6 = vsyncpa [#allocation3], 0  ;;  %s224_s0 = inlined_call_operand.hbm [shape: f32[1,2048], index: 0, kind: input, shape index: {}]   ;;  %s225_s1 = inlined_call_operand.hbm [shape: f32[1,2048], index: 1, kind: output, shape index: {}]  }
   0x1   :  { %7 = vsyncpa [#allocation4], 0  ;;  %s13_s8 = sshll.u32 %s224_s0, 4  ;;  %s186_s9 = smov [#allocation2]   ;;  %s14_s8 = int_to_ptr.hbm [resolvable:$true] %s13_s8 }
   0x2   :  { %s15_s10 = sshll.u32 %s186_s9, 4  ;;  %s16_s10 = int_to_ptr.vmem [resolvable:$true] %s15_s10 }
   0x3   :  { %18 = dma.hbm_to_vmem [thread:$0]  %s14_s8, 256, %s16_s10, [#allocation3]  }
   0x4   :  { %182 = dma.done.wait [#allocation3], 256  }
   0x5   :  { %183 = vsyncadd [#allocation3], 4294967040  ;;  %v201_v0 = vld [vmem:[#allocation2] sm:$0xff]  ;;  %v203_v1 = vld [vmem:[#allocation2 + $0x8] sm:$0xff]  ;;  %s187_s0 = smov [#allocation5]   ;;  %s114_s14 = sshll.u32 %s225_s1, 4  ;;  %s115_s14 = int_to_ptr.hbm [resolvable:$true] %s114_s14 }
   0x6   :  { %v206_v2 = vmul.f32 0.70710677, %v201_v0  ;;  %v209_v3 = vmul.f32 0.70710677, %v203_v1  ;;  %v99_v61 = vmul.f32 0.5, %v201_v0  ;;  %s112_s11 = sshll.u32 %s187_s0, 4  ;;  %s113_s11 = int_to_ptr.vmem [resolvable:$true] %s112_s11 }
   0x8   :  { %v27_v4 = vand.u32 2147483647, %v206_v2  ;;  %v28_v5 = vand.u32 2147483647, %v209_v3  ;;  %v81_v24 = vmul.f32 %v206_v2, %v206_v2  ;;  %v82_v29 = vmul.f32 %v209_v3, %v209_v3 }
   0x9   :  { %vm93_vm8 = vcmp.lt.f32.partialorder %v206_v2, 0.0  ;;  %vm94_vm9 = vcmp.lt.f32.partialorder %v209_v3, 0.0 }
   0xa   :  { %v29_v6 = vmul.f32 0.3275911, %v27_v4  ;;  %v30_v7 = vmul.f32 0.3275911, %v28_v5  ;;  %v83_v32 = vsub.f32 0.0, %v81_v24  ;;  %v84_v36 = vsub.f32 0.0, %v82_v29 }
   0xb   :  { %v100_v5 = vmul.f32 0.5, %v203_v1 }
   0xc   :  { %v31_v8 = vadd.f32 1.0, %v29_v6  ;;  %v32_v9 = vadd.f32 1.0, %v30_v7  ;;  %v85_v39 = vmul.f32 1.442695, %v83_v32  ;;  %v87_v42 = vmul.f32 1.442695, %v84_v36 }
   0xe   :  { %126 = vrcp.f32 %v31_v8  ;;  %vm38_vm0 = vweird.f32 %v31_v8  ;;  %v44_v13 = vand.u32 2147483648, %v31_v8  ;;  %v42_v15 = vand.u32 2147483647, %v31_v8 }
   0xf   :  { %128 = vrcp.f32 %v32_v9  ;;  %vm53_vm2 = vweird.f32 %v32_v9  ;;  %v59_v17 = vand.u32 2147483648, %v32_v9  ;;  %v57_v20 = vand.u32 2147483647, %v32_v9 }
  0x10   :  { %v45_v21 = vor.u32 1.1754944e-38, %v44_v13  ;;  %vm43_vm5 = vcmp.eq.f32.partialorder %v42_v15, 8.507059e+37  ;;  %130 = vpow2.f32 %v85_v39 }
  0x11   :  { %v60_v25 = vor.u32 1.1754944e-38, %v59_v17  ;;  %vm58_vm7 = vcmp.eq.f32.partialorder %v57_v20, 8.507059e+37  ;;  %132 = vpow2.f32 %v87_v42 }
  0x14   :  { %v127_v10 = vpop.eup %126 }
  0x15   :  { %v34_v11 = vmul.f32 %v127_v10, %v31_v8  ;;  %v129_v12 = vpop.eup %128  ;;  %vm39_vm1 = vweird.f32 %v127_v10 }
  0x16   :  { %v49_v16 = vmul.f32 %v129_v12, %v32_v9  ;;  %vm54_vm3 = vweird.f32 %v129_v12  ;;  %vm40_vm4 = vmor %vm38_vm0, %vm39_vm1  ;;  %v131_v51 = vpop.eup %130 }
  0x17   :  { %v35_v14 = vsub.f32 1.0, %v34_v11  ;;  %vm55_vm6 = vmor %vm53_vm2, %vm54_vm3  ;;  %v133_v54 = vpop.eup %132 }
  0x18   :  { %v50_v19 = vsub.f32 1.0, %v49_v16 }
  0x19   :  { %v36_v18 = vmul.f32 %v127_v10, %v35_v14 }
  0x1a   :  { %v51_v23 = vmul.f32 %v129_v12, %v50_v19 }
  0x1b   :  { %v37_v22 = vadd.f32 %v127_v10, %v36_v18 }
  0x1c   :  { %v52_v27 = vadd.f32 %v129_v12, %v51_v23 }
  0x1d   :  { %v41_v26 = vsel %vm40_vm4, %v127_v10, %v37_v22 }
  0x1e   :  { %v46_v28 = vsel %vm43_vm5, %v45_v21, %v41_v26  ;;  %v56_v31 = vsel %vm55_vm6, %v129_v12, %v52_v27 }
  0x1f   :  { %v63_v30 = vmul.f32 1.0614054, %v46_v28  ;;  %v61_v33 = vsel %vm58_vm7, %v60_v25, %v56_v31 }
  0x20   :  { %v64_v35 = vmul.f32 1.0614054, %v61_v33 }
  0x21   :  { %v65_v34 = vadd.f32 -1.4531521, %v63_v30 }
  0x22   :  { %v66_v38 = vadd.f32 -1.4531521, %v64_v35 }
  0x23   :  { %v67_v37 = vmul.f32 %v65_v34, %v46_v28 }
  0x24   :  { %v68_v41 = vmul.f32 %v66_v38, %v61_v33 }
  0x25   :  { %v69_v40 = vadd.f32 1.4214138, %v67_v37 }
  0x26   :  { %v70_v44 = vadd.f32 1.4214138, %v68_v41 }
  0x27   :  { %v71_v43 = vmul.f32 %v69_v40, %v46_v28 }
  0x28   :  { %v72_v46 = vmul.f32 %v70_v44, %v61_v33 }
  0x29   :  { %v73_v45 = vadd.f32 -0.28449672, %v71_v43 }
  0x2a   :  { %v74_v48 = vadd.f32 -0.28449672, %v72_v46 }
  0x2b   :  { %v75_v47 = vmul.f32 %v73_v45, %v46_v28 }
  0x2c   :  { %v76_v50 = vmul.f32 %v74_v48, %v61_v33 }
  0x2d   :  { %v77_v49 = vadd.f32 0.2548296, %v75_v47 }
  0x2e   :  { %v78_v53 = vadd.f32 0.2548296, %v76_v50 }
  0x2f   :  { %v79_v52 = vmul.f32 %v77_v49, %v46_v28 }
  0x30   :  { %v80_v56 = vmul.f32 %v78_v53, %v61_v33 }
  0x31   :  { %v89_v55 = vmul.f32 %v131_v51, %v79_v52 }
  0x32   :  { %v90_v58 = vmul.f32 %v133_v54, %v80_v56 }
  0x33   :  { %v91_v57 = vsub.f32 1.0, %v89_v55 }
  0x34   :  { %v92_v60 = vsub.f32 1.0, %v90_v58 }
  0x35   :  { %v95_v59 = vsub.f32 0.0, %v91_v57 }
  0x36   :  { %v96_v63 = vsub.f32 0.0, %v92_v60 }
  0x37   :  { %v97_v62 = vsel %vm93_vm8, %v95_v59, %v91_v57 }
  0x38   :  { %v101_v4 = vadd.f32 1.0, %v97_v62  ;;  %v98_v6 = vsel %vm94_vm9, %v96_v63, %v92_v60 }
  0x39   :  { %v102_v2 = vadd.f32 1.0, %v98_v6 }
  0x3a   :  { %v103_v7 = vmul.f32 %v101_v4, %v99_v61 }
  0x3b   :  { %v104_v8 = vmul.f32 %v102_v2, %v100_v5 }
  0x3c   :  { %105 = vst [vmem:[#allocation5] sm:$0xff] %v103_v7 }
  0x3d   :  { %106 = vst [vmem:[#allocation5 + $0x8] sm:$0xff] %v104_v8 }
  0x3e   :  { %117 = dma.vmem_to_hbm [thread:$0]  %s113_s11, 256, %s115_s14, [#allocation4]  }
  0x3f   :  { %184 = dma.done.wait [#allocation4], 256  }
  0x40   :  { %185 = vsyncadd [#allocation4], 4294967040 }
  0x41   :  { %122 = vsyncpa [#allocation3], 1 }
  0x42   :  { %123 = vsyncpa [#allocation4], 1 }

</bundles_post_ra>
